<compile_context>
chip_gen: v6e
topology: v6e:2x2x1
jax: 0.10.0
libtpu: 0.0.40
codegen_flags: <defaults>
</compile_context>

<pallas_src>
import jax
import jax.numpy as jnp
from jax.experimental import pallas as pl
from jax.experimental.pallas import tpu as pltpu


def _mlp_kernel(x_ref, w1_ref, b1_ref, w2_ref, b2_ref, w3_ref, b3_ref, o_ref):
    # Cast x tile to the compute dtype in-kernel (free VPU work; avoids a wrapper cast pass).
    x = x_ref[...].astype(w1_ref.dtype)
    # fc1 + ReLU (MXU matmul, f32 accumulate, f32 bias)
    h1 = jnp.dot(x, w1_ref[...], preferred_element_type=jnp.float32) + b1_ref[...]
    h1 = jnp.maximum(h1, 0.0)
    # dropout(p=0.5) -> identity in eval mode
    # TODO(synk): training-mode dropout would use pltpu.prng_seed + pltpu.prng_random_bits
    # fc2 + ReLU
    h2 = jnp.dot(h1.astype(w2_ref.dtype), w2_ref[...],
                 preferred_element_type=jnp.float32) + b2_ref[...]
    h2 = jnp.maximum(h2, 0.0)
    # fc3 (no activation), tight out_size-wide store
    o_ref[...] = (jnp.dot(h2.astype(w3_ref.dtype), w3_ref[...],
                          preferred_element_type=jnp.float32) + b3_ref[...]).astype(o_ref.dtype)


def _round_up(n, m):
    return ((n + m - 1) // m) * m


def _pad_to(a, shape):
    pads = [(0, t - s) for s, t in zip(a.shape, shape)]
    if any(p[1] for p in pads):
        return jnp.pad(a, pads)
    return a


def chatbot_forward(x, params, *, batch_tile=1024, compute_dtype=jnp.bfloat16,
                    out_dtype=jnp.float32):
    """x: [B, input_size]. params: dict of pre-transposed weights (in,out) + 1-D biases.

    Returns [B, output_size] in out_dtype. Padded weight rows/cols are exact zeros, so the
    result matches the unpadded computation exactly (up to compute_dtype rounding).
    """
    B, in_size = x.shape
    w1, b1 = params["w1"], params["b1"]
    w2, b2 = params["w2"], params["b2"]
    w3, b3 = params["w3"], params["b3"]
    h1_size, h2_size, out_size = w1.shape[1], w2.shape[1], w3.shape[1]

    LANE = 128
    in_p = _round_up(in_size, LANE)
    h1_p = _round_up(h1_size, LANE)
    h2_p = _round_up(h2_size, LANE)   # 64 -> 128: lane-dense intermediate, tiny resident weight
    # Output width stays tight (out_size); 4x fewer HBM write bytes beats masked-store cost.

    # Zero-padded, pre-cast weights (tiny, grid-resident); padded rows/cols are exact no-ops.
    w1p = _pad_to(w1, (in_p, h1_p)).astype(compute_dtype)
    b1p = _pad_to(b1.reshape(1, -1), (1, h1_p)).astype(jnp.float32)
    w2p = _pad_to(w2, (h1_p, h2_p)).astype(compute_dtype)
    b2p = _pad_to(b2.reshape(1, -1), (1, h2_p)).astype(jnp.float32)
    w3p = _pad_to(w3, (h2_p, out_size)).astype(compute_dtype)  # tight output width
    b3p = b3.reshape(1, -1).astype(jnp.float32)

    # Batch tiling: big 8-aligned tiles; guarantee >= 2 grid steps when the batch is large
    # enough so the "parallel" axis spans both v7x TensorCores (no-op cost on v5e/v6e).
    B8 = _round_up(B, 8)
    bt = _round_up(min(batch_tile, B8), 8)
    if B8 >= 16 and B8 <= bt:
        bt = _round_up(pl.cdiv(B8, 2), 8)
    Bp = _round_up(B, bt)

    # x goes into the kernel in its original dtype; padding only happens when the batch is not
    # tile-aligned (features are already 128 for ChatbotModel), so the common path has NO extra
    # XLA pad/cast pass over HBM.
    xp = _pad_to(x, (Bp, in_p))

    grid = (Bp // bt,)
    resident = lambda i: (0, 0)  # weights/biases resident across the grid

    x_item = jnp.dtype(xp.dtype).itemsize
    w_item = jnp.dtype(compute_dtype).itemsize
    o_item = jnp.dtype(out_dtype).itemsize
    cost = pl.CostEstimate(
        flops=2 * Bp * (in_p * h1_p + h1_p * h2_p + h2_p * out_size),
        transcendentals=0,
        bytes_accessed=int(
            Bp * in_p * x_item
            + (in_p * h1_p + h1_p * h2_p + h2_p * out_size) * w_item
            + (h1_p + h2_p + out_size) * 4
            + Bp * out_size * o_item
        ),
    )

    out = pl.pallas_call(
        _mlp_kernel,
        out_shape=jax.ShapeDtypeStruct((Bp, out_size), out_dtype),
        grid_spec=pl.GridSpec(
            grid=grid,
            in_specs=[
                pl.BlockSpec((bt, in_p), lambda i: (i, 0)),   # x tile
                pl.BlockSpec((in_p, h1_p), resident),
                pl.BlockSpec((1, h1_p), resident),
                pl.BlockSpec((h1_p, h2_p), resident),
                pl.BlockSpec((1, h2_p), resident),
                pl.BlockSpec((h2_p, out_size), resident),     # fc3 weight, tight width
                pl.BlockSpec((1, out_size), resident),
            ],
            out_specs=pl.BlockSpec((bt, out_size), lambda i: (i, 0)),
        ),
        compiler_params=pltpu.CompilerParams(dimension_semantics=("parallel",)),
        cost_estimate=cost,
    )(xp, w1p, b1p, w2p, b2p, w3p, b3p)

    return out if Bp == B else out[:B]


def init_params(key, input_size, output_size):
    """Deterministic init mimicking nn.Linear's U(-1/sqrt(fan_in), 1/sqrt(fan_in))."""
    def linear(k, fan_in, fan_out):
        kw, kb = jax.random.split(k)
        bound = 1.0 / jnp.sqrt(fan_in)
        w = jax.random.uniform(kw, (fan_in, fan_out), jnp.float32, -bound, bound)  # transposed
        b = jax.random.uniform(kb, (fan_out,), jnp.float32, -bound, bound)
        return w, b

    k1, k2, k3 = jax.random.split(key, 3)
    w1, b1 = linear(k1, input_size, 128)
    w2, b2 = linear(k2, 128, 64)
    w3, b3 = linear(k3, 64, output_size)
    return {"w1": w1, "b1": b1, "w2": w2, "b2": b2, "w3": w3, "b3": b3}


def reference_forward(x, p, compute_dtype=jnp.bfloat16):
    """Pure-JAX reference using the same compute-dtype / f32-accumulate numerics."""
    cd = compute_dtype
    h1 = jnp.maximum(jnp.dot(x.astype(cd), p["w1"].astype(cd),
                             preferred_element_type=jnp.float32) + p["b1"], 0.0)
    h2 = jnp.maximum(jnp.dot(h1.astype(cd), p["w2"].astype(cd),
                             preferred_element_type=jnp.float32) + p["b2"], 0.0)
    return jnp.dot(h2.astype(cd), p["w3"].astype(cd),
                   preferred_element_type=jnp.float32) + p["b3"]


if __name__ == "__main__":
    input_size = 128     # ChatbotModel.input_size
    output_size = 32

    key = jax.random.PRNGKey(0)
    kx1, kx2, kp = jax.random.split(key, 3)
    params = init_params(kp, input_size, output_size)

    # Small batch: single grid step, no padding, no wrapper-side copy passes.
    x_small = jax.random.normal(kx1, (8, input_size), jnp.float32)
    out_small = jax.block_until_ready(chatbot_forward(x_small, params))
    ref_small = reference_forward(x_small, params)
    assert out_small.shape == (8, output_size)
    assert jnp.allclose(out_small, ref_small, atol=2e-3, rtol=2e-3), "mismatch (small batch)"

    # Larger batch: exercises the >=2-step, megacore-parallel tiled path (tile auto-split).
    x_big = jax.random.normal(kx2, (1024, input_size), jnp.float32)
    out_big = jax.block_until_ready(chatbot_forward(x_big, params))
    ref_big = reference_forward(x_big, params)
    assert out_big.shape == (1024, output_size)
    assert jnp.allclose(out_big, ref_big, atol=2e-3, rtol=2e-3), "mismatch (large batch)"

    print("KERNEL_OK")
</pallas_src>

<mosaic_0001>
module attributes {stable_mosaic.version = 11 : i64} {
  func.func @_mlp_kernel(%arg0: i32, %arg1: memref<8x128xf32, #tpu.memory_space<vmem>>, %arg2: memref<128x128xbf16, #tpu.memory_space<vmem>>, %arg3: memref<1x128xf32, #tpu.memory_space<vmem>>, %arg4: memref<128x128xbf16, #tpu.memory_space<vmem>>, %arg5: memref<1x128xf32, #tpu.memory_space<vmem>>, %arg6: memref<128x32xbf16, #tpu.memory_space<vmem>>, %arg7: memref<1x32xf32, #tpu.memory_space<vmem>>, %arg8: memref<8x32xf32, #tpu.memory_space<vmem>>) attributes {dimension_semantics = [#tpu.dimension_semantics<parallel>], iteration_bounds = array<i64: 1>, scalar_prefetch = 0 : i64, scratch_operands = 0 : i64, tpu.core_type = #tpu.core_type<tc>, window_params = [{transform_indices = @transform_0, window_bounds = array<i64: 8, 128>}, {pipeline_mode = #tpu.pipeline_mode<synchronous>, transform_indices = @transform_1, window_bounds = array<i64: 128, 128>}, {pipeline_mode = #tpu.pipeline_mode<synchronous>, transform_indices = @transform_2, window_bounds = array<i64: 1, 128>}, {pipeline_mode = #tpu.pipeline_mode<synchronous>, transform_indices = @transform_3, window_bounds = array<i64: 128, 128>}, {pipeline_mode = #tpu.pipeline_mode<synchronous>, transform_indices = @transform_4, window_bounds = array<i64: 1, 128>}, {pipeline_mode = #tpu.pipeline_mode<synchronous>, transform_indices = @transform_5, window_bounds = array<i64: 128, 32>}, {pipeline_mode = #tpu.pipeline_mode<synchronous>, transform_indices = @transform_6, window_bounds = array<i64: 1, 32>}, {transform_indices = @transform_7, window_bounds = array<i64: 8, 32>}]} {
    %c0 = arith.constant 0 : index
    %c0_0 = arith.constant 0 : index
    %0 = vector.load %arg1[%c0, %c0_0] : memref<8x128xf32, #tpu.memory_space<vmem>>, vector<8x128xf32>
    %1 = arith.truncf %0 : vector<8x128xf32> to vector<8x128xbf16>
    %c0_1 = arith.constant 0 : index
    %c0_2 = arith.constant 0 : index
    %2 = vector.load %arg2[%c0_1, %c0_2] : memref<128x128xbf16, #tpu.memory_space<vmem>>, vector<128x128xbf16>
    %cst = arith.constant dense<0.000000e+00> : vector<8x128xf32>
    %3 = tpu.matmul %1, %2, %cst {dimension_numbers = #tpu.dot_dimension_numbers<[1], [0], [0], [1], [0, 0, 1, 1], [], []>} : vector<8x128xbf16>, vector<128x128xbf16>, vector<8x128xf32> -> vector<8x128xf32>
    %c0_3 = arith.constant 0 : index
    %c0_4 = arith.constant 0 : index
    %4 = vector.load %arg3[%c0_3, %c0_4] : memref<1x128xf32, #tpu.memory_space<vmem>>, vector<1x128xf32>
    %5 = vector.broadcast %4 : vector<1x128xf32> to vector<8x128xf32>
    %6 = arith.addf %3, %5 : vector<8x128xf32>
    %cst_5 = arith.constant 0.000000e+00 : f32
    %7 = vector.broadcast %cst_5 : f32 to vector<8x128xf32>
    %8 = arith.maximumf %6, %7 : vector<8x128xf32>
    %9 = arith.truncf %8 : vector<8x128xf32> to vector<8x128xbf16>
    %c0_6 = arith.constant 0 : index
    %c0_7 = arith.constant 0 : index
    %10 = vector.load %arg4[%c0_6, %c0_7] : memref<128x128xbf16, #tpu.memory_space<vmem>>, vector<128x128xbf16>
    %cst_8 = arith.constant dense<0.000000e+00> : vector<8x128xf32>
    %11 = tpu.matmul %9, %10, %cst_8 {dimension_numbers = #tpu.dot_dimension_numbers<[1], [0], [0], [1], [0, 0, 1, 1], [], []>} : vector<8x128xbf16>, vector<128x128xbf16>, vector<8x128xf32> -> vector<8x128xf32>
    %c0_9 = arith.constant 0 : index
    %c0_10 = arith.constant 0 : index
    %12 = vector.load %arg5[%c0_9, %c0_10] : memref<1x128xf32, #tpu.memory_space<vmem>>, vector<1x128xf32>
    %13 = vector.broadcast %12 : vector<1x128xf32> to vector<8x128xf32>
    %14 = arith.addf %11, %13 : vector<8x128xf32>
    %cst_11 = arith.constant 0.000000e+00 : f32
    %15 = vector.broadcast %cst_11 : f32 to vector<8x128xf32>
    %16 = arith.maximumf %14, %15 : vector<8x128xf32>
    %17 = arith.truncf %16 : vector<8x128xf32> to vector<8x128xbf16>
    %c0_12 = arith.constant 0 : index
    %c0_13 = arith.constant 0 : index
    %18 = vector.load %arg6[%c0_12, %c0_13] : memref<128x32xbf16, #tpu.memory_space<vmem>>, vector<128x32xbf16>
    %cst_14 = arith.constant dense<0.000000e+00> : vector<8x32xf32>
    %19 = tpu.matmul %17, %18, %cst_14 {dimension_numbers = #tpu.dot_dimension_numbers<[1], [0], [0], [1], [0, 0, 1, 1], [], []>} : vector<8x128xbf16>, vector<128x32xbf16>, vector<8x32xf32> -> vector<8x32xf32>
    %c0_15 = arith.constant 0 : index
    %c0_16 = arith.constant 0 : index
    %20 = vector.load %arg7[%c0_15, %c0_16] : memref<1x32xf32, #tpu.memory_space<vmem>>, vector<1x32xf32>
    %21 = vector.broadcast %20 : vector<1x32xf32> to vector<8x32xf32>
    %22 = arith.addf %19, %21 : vector<8x32xf32>
    %c0_17 = arith.constant 0 : index
    %c0_18 = arith.constant 0 : index
    %23 = vector.load %arg8[%c0_17, %c0_18] : memref<8x32xf32, #tpu.memory_space<vmem>>, vector<8x32xf32>
    tpu.vector_store %arg8[%c0_17, %c0_18], %22 {strides = array<i32>} : memref<8x32xf32, #tpu.memory_space<vmem>>, vector<8x32xf32>,
    return
  }
  func.func @transform_0(%arg0: i32) -> (i32, i32) {
    %c0_i32 = arith.constant 0 : i32
    %c0_i32_0 = arith.constant 0 : i32
    return %arg0, %c0_i32 : i32, i32
  }
  func.func @transform_1(%arg0: i32) -> (i32, i32) {
    %c0_i32 = arith.constant 0 : i32
    %c0_i32_0 = arith.constant 0 : i32
    %c0_i32_1 = arith.constant 0 : i32
    return %c0_i32, %c0_i32_0 : i32, i32
  }
  func.func @transform_2(%arg0: i32) -> (i32, i32) {
    %c0_i32 = arith.constant 0 : i32
    %c0_i32_0 = arith.constant 0 : i32
    %c0_i32_1 = arith.constant 0 : i32
    return %c0_i32, %c0_i32_0 : i32, i32
  }
  func.func @transform_3(%arg0: i32) -> (i32, i32) {
    %c0_i32 = arith.constant 0 : i32
    %c0_i32_0 = arith.constant 0 : i32
    %c0_i32_1 = arith.constant 0 : i32
    return %c0_i32, %c0_i32_0 : i32, i32
  }
  func.func @transform_4(%arg0: i32) -> (i32, i32) {
    %c0_i32 = arith.constant 0 : i32
    %c0_i32_0 = arith.constant 0 : i32
    %c0_i32_1 = arith.constant 0 : i32
    return %c0_i32, %c0_i32_0 : i32, i32
  }
  func.func @transform_5(%arg0: i32) -> (i32, i32) {
    %c0_i32 = arith.constant 0 : i32
    %c0_i32_0 = arith.constant 0 : i32
    %c0_i32_1 = arith.constant 0 : i32
    return %c0_i32, %c0_i32_0 : i32, i32
  }
  func.func @transform_6(%arg0: i32) -> (i32, i32) {
    %c0_i32 = arith.constant 0 : i32
    %c0_i32_0 = arith.constant 0 : i32
    %c0_i32_1 = arith.constant 0 : i32
    return %c0_i32, %c0_i32_0 : i32, i32
  }
  func.func @transform_7(%arg0: i32) -> (i32, i32) {
    %c0_i32 = arith.constant 0 : i32
    %c0_i32_0 = arith.constant 0 : i32
    return %arg0, %c0_i32 : i32, i32
  }
}

</mosaic_0001>

<bundles_post_ra>
// kernel: tpu_custom_call.1
= control target key start
LH: loop header
LB: loop body
LE: loop exit
PB: predicated region body
PF: predicated region fallthrough
CT: control target
= control target key end

     0   :  { %12 = vsyncpa [#allocation3], 0  ;;  %s728_s0 = inlined_call_operand.vmem [shape: f32[8,128], index: 0, kind: input, shape index: {}]   ;;  %s729_s1 = inlined_call_operand.vmem [shape: bf16[128,128], index: 1, kind: input, shape index: {}]   ;;  %s730_s2 = inlined_call_operand.vmem [shape: f32[1,128], index: 2, kind: input, shape index: {}]   ;;  %s731_s3 = inlined_call_operand.hbm [shape: bf16[128,128], index: 3, kind: input, shape index: {}]   ;;  %s732_s4 = inlined_call_operand.vmem [shape: f32[1,128], index: 4, kind: input, shape index: {}]   ;;  %s733_s5 = inlined_call_operand.vmem [shape: bf16[128,32], index: 5, kind: input, shape index: {}]   ;;  %s734_s6 = inlined_call_operand.vmem [shape: f32[1,32], index: 6, kind: input, shape index: {}]   ;;  %s735_s7 = inlined_call_operand.hbm [shape: f32[8,32], index: 7, kind: output, shape index: {}]  }
   0x1   :  { %13 = vsyncpa [#allocation4], 0  ;;  %s586_s24 = smov [#allocation2]  }
   0x2   :  { %s25_s25 = sshll.u32 %s586_s24, 4  ;;  %s26_s25 = int_to_ptr.vmem [resolvable:$true] %s25_s25 }
   0x3   :  { %s550_s26 = scalar_lea.vmem %s26_s25, 1024  ;;  %p555_p1 = scmp.lt.s32.totalorder %s26_s25, %s26_s25 }
   0x4   :  { %p551_p0 = scmp.ne.s32.totalorder %s26_s25, %s550_s26  ;;  %p556_p2 = scmp.lt.s32.totalorder %s550_s26, %s550_s26 }
   0x6   :  { %p557_p3 = por %p556_p2, %p555_p1 }
   0x8   :  { %p558_p4 = pnand %p557_p3, %p551_p0 }
   0xa   :  { %561 = shalt.err (!%p558_p4)
}
   0xb   :  { %s587_s27 = smov 64   ;;  %s588_s28 = smov 4  }
   0xc   :  { %31 = dma.hbm_to_vmem [thread:$0]  %s731_s3, 1024, %s26_s25, [#allocation3], %s587_s27, %s587_s27, %s588_s28  }
   0xd   :  { %582 = dma.done.wait [#allocation3], 1024  }
   0xe   :  { %583 = vsyncadd [#allocation3], 4294966272  ;;  %v589_v0 = vmov 0.0   ;;  %vm590_vm0 = vmmov 0   ;;  %v518_v1 = vld [vmem:[%s729_s1 + $0x38] sm:$0xff]   ;;  %v519_v2 = vld [vmem:[%s729_s1 + $0x30] sm:$0xff]  }
   0xf   :  { %452 = vmatprep.subr.bf16.mxu0 %v589_v0  ;;  %468 = vmatprep.mubr.msk.bf16.mxu0 %vm590_vm0, %v589_v0  ;;  %v520_v3 = vld [vmem:[%s729_s1 + $0x28] sm:$0xff]   ;;  %v526_v4 = vld [vmem:[#allocation2 + $0x38] sm:$0xff]   ;;  %v521_v5 = vld [vmem:[%s729_s1 + $0x20] sm:$0xff]   ;;  %s591_s20 = smov [#allocation5]   ;;  %vm381_vm1 = vcmask 261120  }
  0x10   :  { %472 = vmatprep.subr.bf16.mxu1 %v589_v0  ;;  %488 = vmatprep.mubr.msk.bf16.mxu1 %vm590_vm0, %v589_v0  ;;  %v527_v6 = vld [vmem:[#allocation2 + $0x30] sm:$0xff]   ;;  %v522_v7 = vld [vmem:[%s729_s1 + $0x18] sm:$0xff]   ;;  %v528_v8 = vld [vmem:[#allocation2 + $0x28] sm:$0xff]   ;;  %s389_s21 = sshll.u32 %s591_s20, 4  ;;  %s390_s21 = int_to_ptr.vmem [resolvable:$true] %s389_s21 }
  0x11   :  { %453 = vmatpush3.bf16.msra.mxu0 %v518_v1  ;;  %473 = vmatpush3.bf16.msra.mxu1 %v526_v4  ;;  %v523_v9 = vld [vmem:[%s729_s1 + $0x10] sm:$0xff]   ;;  %v529_v10 = vld [vmem:[#allocation2 + $0x20] sm:$0xff]   ;;  %v524_v11 = vld [vmem:[%s729_s1 + $0x8] sm:$0xff]   ;;  %p567_p6 = scmp.lt.s32.totalorder %s390_s21, %s390_s21 }
  0x12   :  { %454 = vmatprep.subr.bf16.mxu0 %v589_v0  ;;  %474 = vmatprep.subr.bf16.mxu1 %v589_v0  ;;  %v530_v12 = vld [vmem:[#allocation2 + $0x18] sm:$0xff]   ;;  %v525_v13 = vld [vmem:[%s729_s1] sm:$0xff]   ;;  %v531_v15 = vld [vmem:[#allocation2 + $0x10] sm:$0xff]  }
  0x13   :  { %v42_v14 = vld [vmem:[%s728_s0] sm:$0xff]  ;;  %v532_v17 = vld [vmem:[#allocation2 + $0x8] sm:$0xff]   ;;  %v534_v19 = vld [vmem:[%s733_s5 + $0x38] sm:$0xff]  }
  0x14   :  { %v43_v16 = vpack.c.bf16 %v42_v14, %v42_v14  ;;  %v533_v18 = vld [vmem:[#allocation2] sm:$0xff]   ;;  %v535_v20 = vld [vmem:[%s733_s5 + $0x30] sm:$0xff]   ;;  %v536_v21 = vld [vmem:[%s733_s5 + $0x28] sm:$0xff]  }
  0x15   :  { %455 = vmatpush3.bf16.msra.mxu0 %v519_v2  ;;  %475 = vmatpush3.bf16.msra.mxu1 %v527_v6  ;;  %v537_v22 = vld [vmem:[%s733_s5 + $0x20] sm:$0xff]   ;;  %v538_v23 = vld [vmem:[%s733_s5 + $0x18] sm:$0xff]   ;;  %v539_v24 = vld [vmem:[%s733_s5 + $0x10] sm:$0xff]  }
  0x16   :  { %456 = vmatprep.subr.bf16.mxu0 %v589_v0  ;;  %476 = vmatprep.subr.bf16.mxu1 %v589_v0  ;;  %v398_v25 = vld [vmem:[%s730_s2] ss:$0 sm:$0xff]  ;;  %v540_v33 = vld [vmem:[%s733_s5 + $0x8] sm:$0xff]  }
  0x17   :  { %v541_v34 = vld [vmem:[%s733_s5] sm:$0xff]  }
  0x18   :  { %v407_v35 = vld [vmem:[%s732_s4] ss:$0 sm:$0xff]  ;;  %s562_s4 = scalar_lea.vmem %s390_s21, 128 }
  0x19   :  { %457 = vmatpush3.bf16.msra.mxu0 %v520_v3  ;;  %477 = vmatpush3.bf16.msra.mxu1 %v528_v8  ;;  %v416_v43 = vld [vmem:[%s734_s6] ss:$0 sm:$0xff]  ;;  %p563_p5 = scmp.ne.s32.totalorder %s390_s21, %s562_s4  ;;  %p568_p7 = scmp.lt.s32.totalorder %s562_s4, %s562_s4 }
  0x1a   :  { %458 = vmatprep.subr.bf16.mxu0 %v589_v0  ;;  %478 = vmatprep.subr.bf16.mxu1 %v589_v0 }
  0x1b   :  { %p569_p8 = por %p568_p7, %p567_p6 }
  0x1d   :  { %459 = vmatpush3.bf16.msra.mxu0 %v521_v5  ;;  %479 = vmatpush3.bf16.msra.mxu1 %v529_v10  ;;  %p570_p9 = pnand %p569_p8, %p563_p5 }
  0x1e   :  { %460 = vmatprep.subr.bf16.mxu0 %v589_v0  ;;  %480 = vmatprep.subr.bf16.mxu1 %v589_v0 }
  0x21   :  { %461 = vmatpush3.bf16.msra.mxu0 %v522_v7  ;;  %481 = vmatpush3.bf16.msra.mxu1 %v530_v12 }
  0x22   :  { %462 = vmatprep.subr.bf16.mxu0 %v589_v0  ;;  %482 = vmatprep.subr.bf16.mxu1 %v589_v0 }
  0x25   :  { %463 = vmatpush3.bf16.msra.mxu0 %v523_v9  ;;  %483 = vmatpush3.bf16.msra.mxu1 %v531_v15 }
  0x26   :  { %464 = vmatprep.subr.bf16.mxu0 %v589_v0  ;;  %484 = vmatprep.subr.bf16.mxu1 %v589_v0 }
  0x29   :  { %465 = vmatpush3.bf16.msra.mxu0 %v524_v11  ;;  %485 = vmatpush3.bf16.msra.mxu1 %v532_v17 }
  0x2a   :  { %466 = vmatprep.subr.bf16.mxu0 %v589_v0  ;;  %486 = vmatprep.subr.bf16.mxu1 %v589_v0 }
  0x2d   :  { %467 = vmatpush3.bf16.msra.mxu0 %v525_v13  ;;  %487 = vmatpush3.bf16.msra.mxu1 %v533_v18 }
  0x2e   :  { %492 = vmatprep.subr.bf16.mxu0 %v589_v0 }
  0x30   :  { %469 = vmatmul.mubr.bf16.vlgmr.msra.gmra.mxu0 %v43_v16 }
  0x31   :  { %508 = vmatprep.mubr.msk.bf16.mxu0 %vm590_vm0, %v589_v0  ;;  %493 = vmatpush3.bf16.msra.mxu0 %v534_v19 }
  0x32   :  { %494 = vmatprep.subr.bf16.mxu0 %v589_v0 }
  0x35   :  { %495 = vmatpush3.bf16.msra.mxu0 %v535_v20 }
  0x36   :  { %496 = vmatprep.subr.bf16.mxu0 %v589_v0 }
  0x39   :  { %497 = vmatpush3.bf16.msra.mxu0 %v536_v21 }
  0x3a   :  { %498 = vmatprep.subr.bf16.mxu0 %v589_v0 }
  0x3d   :  { %499 = vmatpush3.bf16.msra.mxu0 %v537_v22 }
  0x3e   :  { %500 = vmatprep.subr.bf16.mxu0 %v589_v0 }
  0x41   :  { %501 = vmatpush3.bf16.msra.mxu0 %v538_v23 }
  0x42   :  { %502 = vmatprep.subr.bf16.mxu0 %v589_v0 }
  0x45   :  { %503 = vmatpush3.bf16.msra.mxu0 %v539_v24 }
  0x46   :  { %504 = vmatprep.subr.bf16.mxu0 %v589_v0 }
  0x49   :  { %505 = vmatpush3.bf16.msra.mxu0 %v540_v33 }
  0x4a   :  { %506 = vmatprep.subr.bf16.mxu0 %v589_v0 }
  0x4d   :  { %507 = vmatpush3.bf16.msra.mxu0 %v541_v34 }
  0xf0   :  { %v149_v26 = vpop.f32.mrf.mxu0 }
  0xf1   :  { %v150_v27 = vadd.f32 %v398_v25, %v149_v26 }
  0xf2   :  { %v470_v28 = vpop.f32.mrf.mxu0 }
  0xf3   :  { %v155_v29 = vmax.f32 %v150_v27, 0.0 }
  0xf4   :  { %v152_v30 = vpop.f32.mrf.mxu0 }
  0xf5   :  { %v156_v31 = vpack.c.bf16 %v155_v29, %v155_v29 }
  0xf6   :  { %v471_v32 = vpop.f32.mrf.mxu0 }
  0xf7   :  { %489 = vmatmul.mubr.bf16.vlgmr.msra.gmra.mxu1 %v156_v31 }
 0x1b7   :  { %v262_v36 = vpop.f32.mrf.mxu1 }
 0x1b8   :  { %v263_v37 = vadd.f32 %v407_v35, %v262_v36 }
 0x1b9   :  { %v490_v38 = vpop.f32.mrf.mxu1 }
 0x1ba   :  { %v268_v39 = vmax.f32 %v263_v37, 0.0 }
 0x1bb   :  { %v265_v40 = vpop.f32.mrf.mxu1 }
 0x1bc   :  { %v269_v41 = vpack.c.bf16 %v268_v39, %v268_v39 }
 0x1bd   :  { %v491_v42 = vpop.f32.mrf.mxu1 }
 0x1be   :  { %509 = vmatmul.mubr.bf16.vlgmr.msra.gmra.mxu0 %v269_v41 }
 0x27e   :  { %v375_v44 = vpop.f32.mrf.mxu0 }
 0x27f   :  { %v376_v45 = vadd.f32 %v416_v43, %v375_v44 }
 0x280   :  { %v510_v46 = vpop.f32.mrf.mxu0 }
 0x281   :  { %382 = vst.msk [vmem:[#allocation5] sm:$0xff] %vm381_vm1, %v376_v45 }
 0x282   :  { %v378_v47 = vpop.f32.mrf.mxu0 }
 0x283   :  { %573 = shalt.err (!%p570_p9)
}
 0x284   :  { %392 = dma.vmem_to_hbm [thread:$0]  %s390_s21, 128, %s735_s7, [#allocation4]   ;;  %v511_v48 = vpop.f32.mrf.mxu0 }
 0x285   :  { %584 = dma.done.wait [#allocation4], 128  }
 0x286   :  { %585 = vsyncadd [#allocation4], 4294967168 }
 0x287   :  { %396 = vsyncpa [#allocation3], 1 }
 0x288   :  { %397 = vsyncpa [#allocation4], 1 }

</bundles_post_ra>
